<compile_context>
chip_gen: v7x
topology: tpu7x:2x2x1
jax: 0.10.0
libtpu: 0.0.40
codegen_flags: <defaults>
</compile_context>

<pallas_src>
import jax
import jax.numpy as jnp
from jax.experimental import pallas as pl
from jax.experimental.pallas import tpu as pltpu

CONTEXT_SIZE = 2
EMBEDDING_DIM = 10
HIDDEN = 128
LANE = 128      # lane width: pad output trailing dim to a multiple of this
TILE_M = 128    # windows per grid step (128 = native MXU tile on v5e; see note above)

TEST_SENTENCE = (
    "When forty winters shall besiege thy brow,\nAnd dig deep trenches in thy "
    "beauty's field,\nThy youth's proud livery so gazed on now,\nWill be a "
    "totter'd weed of small worth held:\nThen being asked, where all thy beauty "
    "lies,\nWhere all the treasure of thy lusty days;\nTo say, within thine own "
    "deep sunken eyes,\nWere an all-eating shame, and thriftless praise.\nHow "
    "much more praise deserv'd thy beauty's use,\nIf thou couldst answer 'This "
    "fair child of mine\nShall sum my count, and make my old excuse,'\nProving "
    "his beauty by succession thine!\nThis were to be new made when thou art "
    "old,\nAnd see thy blood warm when thou feel'st it cold."
).split()


def _round_up(x, m):
    return (x + m - 1) // m * m


def mlp_kernel(x_ref, w1_ref, b1_ref, w2_ref, b2_ref, out_ref):
    # x_ref : (TILE_M, in_dim=20) bf16  — pre-gathered context embeddings
    # w1_ref: (in_dim, HIDDEN) bf16 ; b1_ref: (1, HIDDEN) f32
    # w2_ref: (HIDDEN, V_pad) bf16  ; b2_ref: (1, V_pad)  f32
    # out_ref: (TILE_M, V_pad) f32   — lane-dense (V_pad multiple of 128)
    h = jnp.dot(x_ref[...], w1_ref[...], preferred_element_type=jnp.float32)
    h = jnp.maximum(h + b1_ref[...], 0.0).astype(jnp.bfloat16)
    y = jnp.dot(h, w2_ref[...], preferred_element_type=jnp.float32) + b2_ref[...]
    out_ref[...] = y


@jax.jit
def n_grams_forward(idx, embed, w1, b1, w2, b2):
    """Batched n-gram forward: out[i] == classify(embed(idx[i]).view(1,-1))."""
    num_windows = idx.shape[0]
    vocab_size, n_dim = embed.shape
    in_dim = CONTEXT_SIZE * n_dim

    m_pad = _round_up(num_windows, TILE_M)
    v_pad = _round_up(vocab_size, LANE)

    # Embedding gather + view(1,-1), hoisted to the wrapper (fused under jit).
    # The M padding is folded into the gather: pad idx rows (with index 0),
    # gather, reshape — no separate zero-slab materialization for x.
    idx = jnp.clip(idx, 0, vocab_size - 1)
    idx_p = jnp.pad(idx, ((0, m_pad - num_windows), (0, 0)))
    x_p = embed[idx_p].reshape(m_pad, in_dim)            # (m_pad, 20) bf16

    # Only the output/vocab axis needs lane padding (zero pads are inert).
    w2_p = jnp.zeros((HIDDEN, v_pad), w2.dtype).at[:, :vocab_size].set(w2)
    b2_p = jnp.zeros((1, v_pad), b2.dtype).at[:, :vocab_size].set(b2)

    grid = (m_pad // TILE_M,)
    flops = 2 * m_pad * (in_dim * HIDDEN + HIDDEN * v_pad)
    bytes_accessed = (m_pad * in_dim * 2        # x (bf16)
                      + in_dim * HIDDEN * 2     # w1 (bf16)
                      + HIDDEN * 4              # b1 (f32)
                      + HIDDEN * v_pad * 2      # w2 (bf16)
                      + v_pad * 4               # b2 (f32)
                      + m_pad * v_pad * 4)      # out (f32)

    out = pl.pallas_call(
        mlp_kernel,
        out_shape=jax.ShapeDtypeStruct((m_pad, v_pad), jnp.float32),
        grid=grid,
        in_specs=[
            # Activations: tiled along the window axis.
            pl.BlockSpec((TILE_M, in_dim), lambda i: (i, 0)),
            # Weights/biases: constant index_map -> resident in VMEM across all
            # grid steps; Buffered(1) avoids pointless double-buffering.
            pl.BlockSpec((in_dim, HIDDEN), lambda i: (0, 0),
                         pipeline_mode=pl.Buffered(1)),
            pl.BlockSpec((1, HIDDEN), lambda i: (0, 0),
                         pipeline_mode=pl.Buffered(1)),
            pl.BlockSpec((HIDDEN, v_pad), lambda i: (0, 0),
                         pipeline_mode=pl.Buffered(1)),
            pl.BlockSpec((1, v_pad), lambda i: (0, 0),
                         pipeline_mode=pl.Buffered(1)),
        ],
        out_specs=pl.BlockSpec((TILE_M, v_pad), lambda i: (i, 0)),
        compiler_params=pltpu.CompilerParams(
            # Inert at grid=(1,); lets the window axis shard across cores only
            # if num_windows ever grows past one tile.
            dimension_semantics=("parallel",),
        ),
        cost_estimate=pl.CostEstimate(
            flops=flops, transcendentals=0, bytes_accessed=bytes_accessed),
    )(x_p, w1, b1, w2_p, b2_p)

    # Slice the padding back off (fused under jit): each row matches the
    # original module's (1, V) output for that context window.
    return out[:num_windows, :vocab_size]


def reference_forward(idx, embed, w1, b1, w2, b2):
    x = embed[idx].reshape(idx.shape[0], -1)
    h = jnp.dot(x, w1, preferred_element_type=jnp.float32) + b1
    h = jnp.maximum(h, 0.0).astype(jnp.bfloat16)
    return jnp.dot(h, w2, preferred_element_type=jnp.float32) + b2


if __name__ == "__main__":
    # Vocabulary built like the PyTorch script (sorted for determinism).
    vocab = sorted(set(TEST_SENTENCE))
    vocab_size = len(vocab)
    word_to_idx = {w: i for i, w in enumerate(vocab)}

    # Every n-gram context window of the sentence, batched into one call.
    num_windows = len(TEST_SENTENCE) - CONTEXT_SIZE
    idx = jnp.array(
        [[word_to_idx[TEST_SENTENCE[i + c]] for c in range(CONTEXT_SIZE)]
         for i in range(num_windows)],
        dtype=jnp.int32)

    # Deterministic parameter init (synthetic, not a checkpoint).
    key = jax.random.PRNGKey(0)
    k_emb, k_w1, k_b1, k_w2, k_b2 = jax.random.split(key, 5)
    in_dim = CONTEXT_SIZE * EMBEDDING_DIM
    embed = jax.random.normal(k_emb, (vocab_size, EMBEDDING_DIM), jnp.float32).astype(jnp.bfloat16)
    w1 = (jax.random.normal(k_w1, (in_dim, HIDDEN), jnp.float32) * 0.1).astype(jnp.bfloat16)
    b1 = jax.random.normal(k_b1, (1, HIDDEN), jnp.float32) * 0.1
    w2 = (jax.random.normal(k_w2, (HIDDEN, vocab_size), jnp.float32) * 0.1).astype(jnp.bfloat16)
    b2 = jax.random.normal(k_b2, (1, vocab_size), jnp.float32) * 0.1

    out = jax.block_until_ready(n_grams_forward(idx, embed, w1, b1, w2, b2))
    ref = reference_forward(idx, embed, w1, b1, w2, b2)

    assert out.shape == (num_windows, vocab_size)
    assert jnp.allclose(out, ref, atol=1e-2, rtol=1e-2)
    print("KERNEL_OK")
</pallas_src>

<mosaic_0001>
module attributes {stable_mosaic.version = 11 : i64} {
  func.func @mlp_kernel(%arg0: i32, %arg1: memref<128x20xbf16, #tpu.memory_space<vmem>>, %arg2: memref<20x128xbf16, #tpu.memory_space<vmem>>, %arg3: memref<1x128xf32, #tpu.memory_space<vmem>>, %arg4: memref<128x128xbf16, #tpu.memory_space<vmem>>, %arg5: memref<1x128xf32, #tpu.memory_space<vmem>>, %arg6: memref<128x128xf32, #tpu.memory_space<vmem>>) attributes {dimension_semantics = [#tpu.dimension_semantics<parallel>], iteration_bounds = array<i64: 1>, scalar_prefetch = 0 : i64, scratch_operands = 0 : i64, tpu.core_type = #tpu.core_type<tc>, window_params = [{transform_indices = @transform_0, window_bounds = array<i64: 128, 20>}, {pipeline_mode = #tpu.pipeline_mode<synchronous>, transform_indices = @transform_1, window_bounds = array<i64: 20, 128>}, {pipeline_mode = #tpu.pipeline_mode<synchronous>, transform_indices = @transform_2, window_bounds = array<i64: 1, 128>}, {pipeline_mode = #tpu.pipeline_mode<synchronous>, transform_indices = @transform_3, window_bounds = array<i64: 128, 128>}, {pipeline_mode = #tpu.pipeline_mode<synchronous>, transform_indices = @transform_4, window_bounds = array<i64: 1, 128>}, {transform_indices = @transform_5, window_bounds = array<i64: 128, 128>}]} {
    %c0 = arith.constant 0 : index
    %c0_0 = arith.constant 0 : index
    %0 = vector.load %arg1[%c0, %c0_0] : memref<128x20xbf16, #tpu.memory_space<vmem>>, vector<128x20xbf16>
    %c0_1 = arith.constant 0 : index
    %c0_2 = arith.constant 0 : index
    %1 = vector.load %arg2[%c0_1, %c0_2] : memref<20x128xbf16, #tpu.memory_space<vmem>>, vector<20x128xbf16>
    %cst = arith.constant dense<0.000000e+00> : vector<128x128xf32>
    %2 = tpu.matmul %0, %1, %cst {dimension_numbers = #tpu.dot_dimension_numbers<[1], [0], [0], [1], [0, 0, 1, 1], [], []>} : vector<128x20xbf16>, vector<20x128xbf16>, vector<128x128xf32> -> vector<128x128xf32>
    %c0_3 = arith.constant 0 : index
    %c0_4 = arith.constant 0 : index
    %3 = vector.load %arg3[%c0_3, %c0_4] : memref<1x128xf32, #tpu.memory_space<vmem>>, vector<1x128xf32>
    %4 = vector.broadcast %3 : vector<1x128xf32> to vector<128x128xf32>
    %5 = arith.addf %2, %4 : vector<128x128xf32>
    %cst_5 = arith.constant 0.000000e+00 : f32
    %6 = vector.broadcast %cst_5 : f32 to vector<128x128xf32>
    %7 = arith.maximumf %5, %6 : vector<128x128xf32>
    %8 = arith.truncf %7 : vector<128x128xf32> to vector<128x128xbf16>
    %c0_6 = arith.constant 0 : index
    %c0_7 = arith.constant 0 : index
    %9 = vector.load %arg4[%c0_6, %c0_7] : memref<128x128xbf16, #tpu.memory_space<vmem>>, vector<128x128xbf16>
    %cst_8 = arith.constant dense<0.000000e+00> : vector<128x128xf32>
    %10 = tpu.matmul %8, %9, %cst_8 {dimension_numbers = #tpu.dot_dimension_numbers<[1], [0], [0], [1], [0, 0, 1, 1], [], []>} : vector<128x128xbf16>, vector<128x128xbf16>, vector<128x128xf32> -> vector<128x128xf32>
    %c0_9 = arith.constant 0 : index
    %c0_10 = arith.constant 0 : index
    %11 = vector.load %arg5[%c0_9, %c0_10] : memref<1x128xf32, #tpu.memory_space<vmem>>, vector<1x128xf32>
    %12 = vector.broadcast %11 : vector<1x128xf32> to vector<128x128xf32>
    %13 = arith.addf %10, %12 : vector<128x128xf32>
    %c0_11 = arith.constant 0 : index
    %c0_12 = arith.constant 0 : index
    %14 = vector.load %arg6[%c0_11, %c0_12] : memref<128x128xf32, #tpu.memory_space<vmem>>, vector<128x128xf32>
    tpu.vector_store %arg6[%c0_11, %c0_12], %13 {strides = array<i32>} : memref<128x128xf32, #tpu.memory_space<vmem>>, vector<128x128xf32>,
    return
  }
  func.func @transform_0(%arg0: i32) -> (i32, i32) {
    %c0_i32 = arith.constant 0 : i32
    %c0_i32_0 = arith.constant 0 : i32
    return %arg0, %c0_i32 : i32, i32
  }
  func.func @transform_1(%arg0: i32) -> (i32, i32) {
    %c0_i32 = arith.constant 0 : i32
    %c0_i32_0 = arith.constant 0 : i32
    %c0_i32_1 = arith.constant 0 : i32
    return %c0_i32, %c0_i32_0 : i32, i32
  }
  func.func @transform_2(%arg0: i32) -> (i32, i32) {
    %c0_i32 = arith.constant 0 : i32
    %c0_i32_0 = arith.constant 0 : i32
    %c0_i32_1 = arith.constant 0 : i32
    return %c0_i32, %c0_i32_0 : i32, i32
  }
  func.func @transform_3(%arg0: i32) -> (i32, i32) {
    %c0_i32 = arith.constant 0 : i32
    %c0_i32_0 = arith.constant 0 : i32
    %c0_i32_1 = arith.constant 0 : i32
    return %c0_i32, %c0_i32_0 : i32, i32
  }
  func.func @transform_4(%arg0: i32) -> (i32, i32) {
    %c0_i32 = arith.constant 0 : i32
    %c0_i32_0 = arith.constant 0 : i32
    %c0_i32_1 = arith.constant 0 : i32
    return %c0_i32, %c0_i32_0 : i32, i32
  }
  func.func @transform_5(%arg0: i32) -> (i32, i32) {
    %c0_i32 = arith.constant 0 : i32
    %c0_i32_0 = arith.constant 0 : i32
    return %arg0, %c0_i32 : i32, i32
  }
}

</mosaic_0001>

<bundles_post_ra>
// kernel: n_grams_forward.1
= control target key start
LH: loop header
LB: loop body
LE: loop exit
PB: predicated region body
PF: predicated region fallthrough
CT: control target
= control target key end

     0   :  { %vm96_vm0 = vcmask 162816   ;;  %vm121_vm1 = vcmask 1041408   ;;  %s721_s1 = inlined_call_operand.vmem [shape: bf16[20,128], index: 1, kind: input, shape index: {}]   ;;  %s722_s0 = inlined_call_operand.vmem [shape: bf16[128,20], index: 0, kind: input, shape index: {}]   ;;  %s723_s3 = inlined_call_operand.vmem [shape: bf16[128,128], index: 3, kind: input, shape index: {}]   ;;  %s724_s2 = inlined_call_operand.vmem [shape: f32[1,128], index: 2, kind: input, shape index: {}]   ;;  %s725_s4 = inlined_call_operand.vmem [shape: f32[1,128], index: 4, kind: input, shape index: {}]   ;;  %s726_s5 = inlined_call_operand.vmem [shape: f32[128,128], index: 5, kind: output, shape index: {}]  }
   0x1   :  { %v557_v0 = vld [vmem:[%s721_s1] sm:$0xff]   ;;  %v558_v1 = vld [vmem:[%s721_s1 + $0x8] ss:$0 sps:$4 sm:$0x33]   ;;  %v561_v5 = vld [vmem:[%s722_s0 + $0x10] sm:$0xff]  }
   0x2   :  { %v559_v2 = vld [vmem:[%s722_s0] sm:$0xff]   ;;  %488 = vmatprep.subr.bf16.mxu0 %v557_v0  ;;  %v123_v3 = vsel %vm121_vm1, %v558_v1, 0  ;;  %v560_v4 = vld [vmem:[%s722_s0 + $0x8] sm:$0xff]   ;;  %v562_v8 = vld [vmem:[%s722_s0 + $0x18] sm:$0xff]  }
   0x3   :  { %489 = vmatpush3.bf16.msra.mxu0 %v557_v0  ;;  %492 = vmatprep.mubr.msk.bf16.mxu0 %vm96_vm0, %v559_v2  ;;  %v567_v6 = vld [vmem:[%s723_s3] sm:$0xff]   ;;  %v568_v7 = vld [vmem:[%s723_s3 + $0x8] sm:$0xff]   ;;  %v569_v9 = vld [vmem:[%s723_s3 + $0x10] sm:$0xff]  }
   0x4   :  { %556 = vmatprep.subr.msk.bf16.mxu0 %vm121_vm1, %v558_v1  ;;  %540 = vmatprep.subr.bf16.mxu1 %v567_v6  ;;  %v563_v10 = vld [vmem:[%s722_s0 + $0x20] sm:$0xff]   ;;  %v570_v11 = vld [vmem:[%s723_s3 + $0x18] sm:$0xff]   ;;  %v564_v13 = vld [vmem:[%s722_s0 + $0x28] sm:$0xff]  }
   0x5   :  { %548 = vmatpush3.bf16.msra.mxu1 %v567_v6  ;;  %v571_v12 = vld [vmem:[%s723_s3 + $0x20] sm:$0xff]   ;;  %v565_v14 = vld [vmem:[%s722_s0 + $0x30] sm:$0xff]   ;;  %v572_v15 = vld [vmem:[%s723_s3 + $0x28] sm:$0xff]  }
   0x6   :  { %541 = vmatprep.subr.bf16.mxu1 %v568_v7  ;;  %v566_v16 = vld [vmem:[%s722_s0 + $0x38] sm:$0xff]   ;;  %v573_v17 = vld [vmem:[%s723_s3 + $0x30] sm:$0xff]   ;;  %v434_v19 = vld [vmem:[%s724_s2] ss:$0 sm:$0xff] }
   0x7   :  { %491 = vmatpush3.bf16.msra.mxu0 %v123_v3  ;;  %v574_v18 = vld [vmem:[%s723_s3 + $0x38] sm:$0xff]  }
   0x8   :  { %508 = vmatprep.subr.bf16.mxu0 %v567_v6 }
   0x9   :  { %549 = vmatpush3.bf16.msra.mxu1 %v568_v7 }
   0xa   :  { %493 = vmatmul.mubr.msk.bf16.vlgmr.msra.gmra.mrb[0].mxu0 %vm96_vm0, %v560_v4  ;;  %542 = vmatprep.subr.bf16.mxu1 %v569_v9 }
   0xb   :  { %496 = vmatprep.mubr.msk.bf16.mxu0 %vm96_vm0, %v561_v5  ;;  %509 = vmatpush3.bf16.msra.mxu0 %v567_v6 }
   0xc   :  { %510 = vmatprep.subr.bf16.mxu0 %v568_v7 }
   0xd   :  { %550 = vmatpush3.bf16.msra.mxu1 %v569_v9 }
   0xe   :  { %543 = vmatprep.subr.bf16.mxu1 %v570_v11 }
   0xf   :  { %511 = vmatpush3.bf16.msra.mxu0 %v568_v7 }
  0x10   :  { %512 = vmatprep.subr.bf16.mxu0 %v569_v9 }
  0x11   :  { %551 = vmatpush3.bf16.msra.mxu1 %v570_v11 }
  0x12   :  { %497 = vmatmul.mubr.msk.bf16.gmra.mrb[4].mxu0 %vm96_vm0, %v562_v8  ;;  %544 = vmatprep.subr.bf16.mxu1 %v571_v12 }
  0x13   :  { %500 = vmatprep.mubr.msk.bf16.mxu0 %vm96_vm0, %v563_v10  ;;  %513 = vmatpush3.bf16.msra.mxu0 %v569_v9 }
  0x14   :  { %514 = vmatprep.subr.bf16.mxu0 %v570_v11 }
  0x15   :  { %552 = vmatpush3.bf16.msra.mxu1 %v571_v12 }
  0x16   :  { %545 = vmatprep.subr.bf16.mxu1 %v572_v15 }
  0x17   :  { %515 = vmatpush3.bf16.msra.mxu0 %v570_v11 }
  0x18   :  { %516 = vmatprep.subr.bf16.mxu0 %v571_v12 }
  0x19   :  { %553 = vmatpush3.bf16.msra.mxu1 %v572_v15 }
  0x1a   :  { %501 = vmatmul.mubr.msk.bf16.gmra.mrb[8].mxu0 %vm96_vm0, %v564_v13  ;;  %546 = vmatprep.subr.bf16.mxu1 %v573_v17 }
  0x1b   :  { %504 = vmatprep.mubr.msk.bf16.mxu0 %vm96_vm0, %v565_v14  ;;  %517 = vmatpush3.bf16.msra.mxu0 %v571_v12  ;;  %v453_v12 = vld [vmem:[%s725_s4] ss:$0 sm:$0xff] }
  0x1c   :  { %518 = vmatprep.subr.bf16.mxu0 %v572_v15 }
  0x1d   :  { %554 = vmatpush3.bf16.msra.mxu1 %v573_v17 }
  0x1e   :  { %547 = vmatprep.subr.bf16.mxu1 %v574_v18 }
  0x1f   :  { %519 = vmatpush3.bf16.msra.mxu0 %v572_v15 }
  0x20   :  { %520 = vmatprep.subr.bf16.mxu0 %v573_v17 }
  0x21   :  { %555 = vmatpush3.bf16.msra.mxu1 %v574_v18 }
  0x22   :  { %505 = vmatmul.mubr.msk.bf16.gmra.mrb[12].mxu0 %vm96_vm0, %v566_v16 }
  0x23   :  { %521 = vmatpush3.bf16.msra.mxu0 %v573_v17 }
  0x24   :  { %522 = vmatprep.subr.bf16.mxu0 %v574_v18 }
  0x27   :  { %523 = vmatpush3.bf16.msra.mxu0 %v574_v18 }
  0xdd   :  { %v494_v20 = vpop.f32.mrb[0].mxu0 }
  0xde   :  { %v168_v21 = vadd.f32 %v494_v20, %v434_v19  ;;  %v159_v22 = vpop.f32.mrb[1].mxu0 }
  0xdf   :  { %v160_v23 = vadd.f32 %v434_v19, %v159_v22  ;;  %v495_v24 = vpop.f32.mrb[2].mxu0 }
  0xe0   :  { %v171_v25 = vadd.f32 %v495_v24, %v434_v19  ;;  %v162_v26 = vpop.f32.mrb[3].mxu0  ;;  %v224_v28 = vmax.f32 %v168_v21, 0.0 }
  0xe1   :  { %v163_v27 = vadd.f32 %v434_v19, %v162_v26  ;;  %v222_v30 = vmax.f32 %v160_v23, 0.0 }
  0xe2   :  { %v225_v29 = vmax.f32 %v171_v25, 0.0 }
  0xe3   :  { %v223_v31 = vmax.f32 %v163_v27, 0.0 }
  0xe4   :  { %v239_v32 = vpack.c.bf16 %v225_v29, %v224_v28 }
  0xe5   :  { %v238_v33 = vpack.c.bf16 %v223_v31, %v222_v30  ;;  %v498_v34 = vpop.f32.mrb[4].mxu0 }
  0xe6   :  { %v184_v35 = vadd.f32 %v498_v34, %v434_v19  ;;  %v175_v36 = vpop.f32.mrb[5].mxu0 }
  0xe7   :  { %v176_v37 = vadd.f32 %v434_v19, %v175_v36  ;;  %v499_v38 = vpop.f32.mrb[6].mxu0  ;;  %524 = vmatprep.mubr.bf16.mxu0 %v238_v33 }
  0xe8   :  { %v187_v39 = vadd.f32 %v499_v38, %v434_v19  ;;  %v178_v40 = vpop.f32.mrb[7].mxu0  ;;  %525 = vmatmul.mubr.bf16.vlgmr.msra.gmra.mrb[16].mxu0 %v239_v32  ;;  %v228_v42 = vmax.f32 %v184_v35, 0.0 }
  0xe9   :  { %v179_v41 = vadd.f32 %v434_v19, %v178_v40  ;;  %v226_v44 = vmax.f32 %v176_v37, 0.0 }
  0xea   :  { %v229_v43 = vmax.f32 %v187_v39, 0.0 }
  0xeb   :  { %v227_v45 = vmax.f32 %v179_v41, 0.0 }
  0xec   :  { %v241_v46 = vpack.c.bf16 %v229_v43, %v228_v42 }
  0xed   :  { %v502_v47 = vpop.f32.mrb[8].mxu0  ;;  %v240_v48 = vpack.c.bf16 %v227_v45, %v226_v44 }
  0xee   :  { %v200_v49 = vadd.f32 %v502_v47, %v434_v19  ;;  %v191_v50 = vpop.f32.mrb[9].mxu0 }
  0xef   :  { %v192_v51 = vadd.f32 %v434_v19, %v191_v50  ;;  %v503_v52 = vpop.f32.mrb[10].mxu0  ;;  %528 = vmatprep.mubr.bf16.mxu1 %v240_v48 }
  0xf0   :  { %v203_v53 = vadd.f32 %v503_v52, %v434_v19  ;;  %v194_v54 = vpop.f32.mrb[11].mxu0  ;;  %529 = vmatmul.mubr.bf16.vlgmr.msra.gmra.mrb[0].mxu1 %v241_v46  ;;  %v232_v56 = vmax.f32 %v200_v49, 0.0 }
  0xf1   :  { %v195_v55 = vadd.f32 %v434_v19, %v194_v54  ;;  %v230_v58 = vmax.f32 %v192_v51, 0.0 }
  0xf2   :  { %v233_v57 = vmax.f32 %v203_v53, 0.0 }
  0xf3   :  { %v231_v59 = vmax.f32 %v195_v55, 0.0 }
  0xf4   :  { %v243_v60 = vpack.c.bf16 %v233_v57, %v232_v56 }
  0xf5   :  { %v242_v61 = vpack.c.bf16 %v231_v59, %v230_v58  ;;  %v506_v62 = vpop.f32.mrb[12].mxu0 }
  0xf6   :  { %v216_v63 = vadd.f32 %v506_v62, %v434_v19  ;;  %v207_v0 = vpop.f32.mrb[13].mxu0 }
  0xf7   :  { %v208_v1 = vadd.f32 %v434_v19, %v207_v0  ;;  %v507_v2 = vpop.f32.mrb[14].mxu0  ;;  %532 = vmatprep.mubr.bf16.mxu1 %v242_v61 }
  0xf8   :  { %v219_v3 = vadd.f32 %v507_v2, %v434_v19  ;;  %v210_v4 = vpop.f32.mrb[15].mxu0  ;;  %533 = vmatmul.mubr.bf16.gmra.mrb[4].mxu1 %v243_v60  ;;  %v236_v6 = vmax.f32 %v216_v63, 0.0 }
  0xf9   :  { %v211_v5 = vadd.f32 %v434_v19, %v210_v4  ;;  %v234_v8 = vmax.f32 %v208_v1, 0.0 }
  0xfa   :  { %v237_v7 = vmax.f32 %v219_v3, 0.0 }
  0xfb   :  { %v235_v9 = vmax.f32 %v211_v5, 0.0 }
  0xfc   :  { %v245_v10 = vpack.c.bf16 %v237_v7, %v236_v6 }
  0xfd   :  { %v244_v11 = vpack.c.bf16 %v235_v9, %v234_v8 }
  0xff   :  { %536 = vmatprep.mubr.bf16.mxu1 %v244_v11 }
 0x100   :  { %537 = vmatmul.mubr.bf16.gmra.mrb[8].mxu1 %v245_v10 }
 0x1bb   :  { %v526_v13 = vpop.f32.mrb[16].mxu0 }
 0x1bc   :  { %v360_v14 = vadd.f32 %v526_v13, %v453_v12  ;;  %v351_v15 = vpop.f32.mrb[17].mxu0 }
 0x1bd   :  { %v352_v16 = vadd.f32 %v453_v12, %v351_v15  ;;  %v527_v17 = vpop.f32.mrb[18].mxu0 }
 0x1be   :  { %416 = vst [vmem:[%s726_s5 + $0x10] sm:$0xff] %v360_v14  ;;  %v363_v18 = vadd.f32 %v527_v17, %v453_v12  ;;  %v354_v19 = vpop.f32.mrb[19].mxu0 }
 0x1bf   :  { %414 = vst [vmem:[%s726_s5] sm:$0xff] %v352_v16  ;;  %v355_v20 = vadd.f32 %v453_v12, %v354_v19 }
 0x1c0   :  { %417 = vst [vmem:[%s726_s5 + $0x18] sm:$0xff] %v363_v18 }
 0x1c1   :  { %415 = vst [vmem:[%s726_s5 + $0x8] sm:$0xff] %v355_v20 }
 0x1c3   :  { %v530_v21 = vpop.f32.mrb[0].mxu1 }
 0x1c4   :  { %v376_v22 = vadd.f32 %v530_v21, %v453_v12  ;;  %v367_v23 = vpop.f32.mrb[1].mxu1 }
 0x1c5   :  { %v368_v24 = vadd.f32 %v453_v12, %v367_v23  ;;  %v531_v25 = vpop.f32.mrb[2].mxu1 }
 0x1c6   :  { %420 = vst [vmem:[%s726_s5 + $0x30] sm:$0xff] %v376_v22  ;;  %v379_v26 = vadd.f32 %v531_v25, %v453_v12  ;;  %v370_v27 = vpop.f32.mrb[3].mxu1 }
 0x1c7   :  { %418 = vst [vmem:[%s726_s5 + $0x20] sm:$0xff] %v368_v24  ;;  %v371_v28 = vadd.f32 %v453_v12, %v370_v27 }
 0x1c8   :  { %421 = vst [vmem:[%s726_s5 + $0x38] sm:$0xff] %v379_v26 }
 0x1c9   :  { %419 = vst [vmem:[%s726_s5 + $0x28] sm:$0xff] %v371_v28 }
 0x1cb   :  { %v534_v29 = vpop.f32.mrb[4].mxu1 }
 0x1cc   :  { %v392_v30 = vadd.f32 %v534_v29, %v453_v12  ;;  %v383_v31 = vpop.f32.mrb[5].mxu1 }
 0x1cd   :  { %v384_v32 = vadd.f32 %v453_v12, %v383_v31  ;;  %v535_v33 = vpop.f32.mrb[6].mxu1 }
 0x1ce   :  { %424 = vst [vmem:[%s726_s5 + $0x50] sm:$0xff] %v392_v30  ;;  %v395_v34 = vadd.f32 %v535_v33, %v453_v12  ;;  %v386_v35 = vpop.f32.mrb[7].mxu1 }
 0x1cf   :  { %422 = vst [vmem:[%s726_s5 + $0x40] sm:$0xff] %v384_v32  ;;  %v387_v36 = vadd.f32 %v453_v12, %v386_v35 }
 0x1d0   :  { %425 = vst [vmem:[%s726_s5 + $0x58] sm:$0xff] %v395_v34 }
 0x1d1   :  { %423 = vst [vmem:[%s726_s5 + $0x48] sm:$0xff] %v387_v36 }
 0x1d3   :  { %v538_v37 = vpop.f32.mrb[8].mxu1 }
 0x1d4   :  { %v408_v38 = vadd.f32 %v538_v37, %v453_v12  ;;  %v399_v39 = vpop.f32.mrb[9].mxu1 }
 0x1d5   :  { %v400_v40 = vadd.f32 %v453_v12, %v399_v39  ;;  %v539_v41 = vpop.f32.mrb[10].mxu1 }
 0x1d6   :  { %428 = vst [vmem:[%s726_s5 + $0x70] sm:$0xff] %v408_v38  ;;  %v411_v42 = vadd.f32 %v539_v41, %v453_v12  ;;  %v402_v43 = vpop.f32.mrb[11].mxu1 }
 0x1d7   :  { %426 = vst [vmem:[%s726_s5 + $0x60] sm:$0xff] %v400_v40  ;;  %v403_v44 = vadd.f32 %v453_v12, %v402_v43 }
 0x1d8   :  { %429 = vst [vmem:[%s726_s5 + $0x78] sm:$0xff] %v411_v42 }
 0x1d9   :  { %427 = vst [vmem:[%s726_s5 + $0x68] sm:$0xff] %v403_v44 }

</bundles_post_ra>
